<compile_context>
chip_gen: v6e
topology: v6e:2x2x1
jax: 0.10.0
libtpu: 0.0.40
codegen_flags: <defaults>
</compile_context>

<pallas_src>
import math

import jax
import jax.numpy as jnp
from jax.experimental import pallas as pl
from jax.experimental.pallas import tpu as pltpu

# ---------------- model hyper-parameters (small, consistent with the module) -
N_HEADS = 4
D_EMBED = 32
D_CROSS = 16
D_HEAD = D_EMBED // N_HEADS
BATCH = 2
L_Q = 8       # query sequence length
L_KV = 12     # key/value (cross) sequence length


def cross_attention_kernel(x_ref, y_ref, w_ref, b_ref, o_ref):
    """Whole problem in one invocation (no grid).

    x_ref : (B*Lq, D)        flattened queries (wrapper-side reshape)
    y_ref : (B, Lkv, Dc)     cross inputs, kept 3-D (Lkv=12 not 8-aligned)
    w_ref : (48, 64) slab    [0:32, 0:32]=Wq^T*scale  [0:32, 32:64]=Wo^T
                             [32:48, 0:64]=[Wk^T | Wv^T]
    b_ref : (1, 128) slab    [0:32]=bq*scale [32:96]=[bk|bv] [96:128]=bo
    o_ref : (B*Lq, D)        flattened output
    """
    D = D_EMBED
    Dc = D_CROSS

    # Static sub-views of the packed parameter slabs (read once).
    wq = w_ref[0:D, 0:D]                 # (32, 32), scale folded in
    wo = w_ref[0:D, D:2 * D]             # (32, 32)
    wkv = w_ref[D:D + Dc, 0:2 * D]       # (16, 64)  [Wk^T | Wv^T]
    bq = b_ref[:, 0:D]                   # (1, 32), scale folded in
    bkv = b_ref[:, D:3 * D]              # (1, 64)  [bk | bv]
    bo = b_ref[:, 3 * D:4 * D]           # (1, 32)

    # Q projection for all batch rows at once (Lq=8 is sublane aligned).
    q2 = jnp.dot(x_ref[...], wq, preferred_element_type=jnp.float32) + bq

    for b in range(BATCH):               # static loop, BATCH = 2
        yb = y_ref[b]                    # (Lkv, Dc) -- clean leading-dim index
        kvb = jnp.dot(yb, wkv, preferred_element_type=jnp.float32) + bkv  # (Lkv, 2D)
        qb = q2[b * L_Q:(b + 1) * L_Q, :]                                 # (Lq, D)

        acc = None
        for h in range(N_HEADS):         # static loop, N_HEADS = 4
            lo = h * D_HEAD
            qh = qb[:, lo:lo + D_HEAD]                 # (Lq, dh)
            kh = kvb[:, lo:lo + D_HEAD]                # (Lkv, dh)
            vh = kvb[:, D + lo:D + lo + D_HEAD]        # (Lkv, dh)

            # Scores: contract over dh (no explicit transpose of kh needed).
            s = jnp.einsum('qd,kd->qk', qh, kh,
                           preferred_element_type=jnp.float32)  # (Lq, Lkv)
            s = s - jnp.max(s, axis=-1, keepdims=True)          # stable softmax
            p = jnp.exp(s)
            inv = pl.reciprocal(jnp.sum(p, axis=-1, keepdims=True), approx=True)
            oh = jnp.dot(p, vh, preferred_element_type=jnp.float32) * inv  # (Lq, dh)

            # Fold the head-concat into sublane-aligned row slices of Wo^T.
            contrib = jnp.dot(oh, wo[lo:lo + D_HEAD, :],
                              preferred_element_type=jnp.float32)  # (Lq, D)
            acc = contrib if acc is None else acc + contrib

        # Aligned 8-row store into the lane-contiguous 2-D output slab.
        o_ref[b * L_Q:(b + 1) * L_Q, :] = (acc + bo).astype(o_ref.dtype)


def prepare_params(p):
    """One-time weight transforms (constant-fold; cache alongside the weights).

    PyTorch nn.Linear computes x @ W.T + b with W of shape (out, in), so the
    weights are pre-transposed.  The attention scale is folded into Wq/bq,
    Wk/Wv are fused into a single (Dc, 2D) matrix, and everything is packed
    into one weight slab + one bias row to minimize operand DMAs.
    """
    inv_s = 1.0 / math.sqrt(D_HEAD)
    wq = p["wq"].T * inv_s                                      # (D, D)
    wo = p["wo"].T                                              # (D, D)
    wkv = jnp.concatenate([p["wk"].T, p["wv"].T], axis=1)       # (Dc, 2D)

    w_slab = jnp.concatenate(
        [jnp.concatenate([wq, wo], axis=1),                     # (D, 2D)
         wkv],                                                  # (Dc, 2D)
        axis=0)                                                 # (D+Dc, 2D) = (48, 64)
    b_slab = jnp.concatenate(
        [p["bq"] * inv_s, p["bk"], p["bv"], p["bo"]]).reshape(1, -1)  # (1, 4D) = (1, 128)
    return dict(w=w_slab, b=b_slab)


def cross_attention(x, y, pp):
    """x: (B, Lq, D), y: (B, Lkv, Dc), pp: prepare_params(...) output."""
    B, Lq, D = x.shape

    x2 = x.reshape(B * Lq, D)            # free contiguous reshape in HBM/XLA

    vmem = pl.BlockSpec(memory_space=pltpu.MemorySpace.VMEM)
    out2 = pl.pallas_call(
        cross_attention_kernel,
        out_shape=jax.ShapeDtypeStruct((B * Lq, D), x.dtype),
        in_specs=[vmem, vmem, vmem, vmem],
        out_specs=vmem,
    )(x2, y, pp["w"], pp["b"])

    return out2.reshape(B, Lq, D)


def init_params(key):
    """Deterministic init mimicking nn.Linear default: U(-1/sqrt(fan_in), 1/sqrt(fan_in))."""
    ks = jax.random.split(key, 8)

    def lin(kw, kb, fan_in, fan_out):
        bound = 1.0 / math.sqrt(fan_in)
        w = jax.random.uniform(kw, (fan_out, fan_in), jnp.float32, -bound, bound)
        b = jax.random.uniform(kb, (fan_out,), jnp.float32, -bound, bound)
        return w, b

    wq, bq = lin(ks[0], ks[1], D_EMBED, D_EMBED)
    wk, bk = lin(ks[2], ks[3], D_CROSS, D_EMBED)
    wv, bv = lin(ks[4], ks[5], D_CROSS, D_EMBED)
    wo, bo = lin(ks[6], ks[7], D_EMBED, D_EMBED)
    return dict(wq=wq, bq=bq, wk=wk, bk=bk, wv=wv, bv=bv, wo=wo, bo=bo)


def reference_cross_attention(x, y, p):
    """Pure-JAX reference matching the PyTorch forward exactly (unfused weights)."""
    B, Lq, D = x.shape
    q = x @ p["wq"].T + p["bq"]
    k = y @ p["wk"].T + p["bk"]
    v = y @ p["wv"].T + p["bv"]

    def split(t):
        return t.reshape(B, -1, N_HEADS, D_HEAD).transpose(0, 2, 1, 3)  # (B,H,L,dh)

    qh, kh, vh = split(q), split(k), split(v)
    w = jnp.einsum("bhqd,bhkd->bhqk", qh, kh) / math.sqrt(D_HEAD)
    w = jax.nn.softmax(w, axis=-1)
    o = jnp.einsum("bhqk,bhkd->bhqd", w, vh)
    o = o.transpose(0, 2, 1, 3).reshape(B, Lq, D)
    return o @ p["wo"].T + p["bo"]


if __name__ == "__main__":
    key = jax.random.PRNGKey(0)
    kx, ky, kp = jax.random.split(key, 3)

    x = jax.random.normal(kx, (BATCH, L_Q, D_EMBED), jnp.float32)
    y = jax.random.normal(ky, (BATCH, L_KV, D_CROSS), jnp.float32)
    params = init_params(kp)
    prepped = prepare_params(params)          # one-time weight prep (off hot path)

    out = cross_attention(x, y, prepped)
    out = jax.block_until_ready(out)

    ref = reference_cross_attention(x, y, params)
    assert out.shape == (BATCH, L_Q, D_EMBED)
    # Tolerance accounts for pl.reciprocal(approx=True) in the softmax denom
    # (~1e-4 relative) on top of f32 accumulation.
    assert jnp.allclose(out, ref, atol=2e-3, rtol=2e-3), "mismatch vs reference"

    print("KERNEL_OK")
</pallas_src>

<mosaic_0001>
module attributes {stable_mosaic.version = 11 : i64} {
  func.func @cross_attention_kernel(%arg0: memref<16x32xf32, #tpu.memory_space<vmem>>, %arg1: memref<2x12x16xf32, #tpu.memory_space<vmem>>, %arg2: memref<48x64xf32, #tpu.memory_space<vmem>>, %arg3: memref<1x128xf32, #tpu.memory_space<vmem>>, %arg4: memref<16x32xf32, #tpu.memory_space<vmem>>) attributes {dimension_semantics = [], scalar_prefetch = 0 : i64, scratch_operands = 0 : i64, tpu.core_type = #tpu.core_type<tc>} {
    %c0 = arith.constant 0 : index
    %c0_0 = arith.constant 0 : index
    %0 = vector.load %arg2[%c0, %c0_0] : memref<48x64xf32, #tpu.memory_space<vmem>>, vector<32x32xf32>
    %c0_1 = arith.constant 0 : index
    %c32 = arith.constant 32 : index
    %1 = vector.load %arg2[%c0_1, %c32] : memref<48x64xf32, #tpu.memory_space<vmem>>, vector<32x32xf32>
    %c32_2 = arith.constant 32 : index
    %c0_3 = arith.constant 0 : index
    %2 = vector.load %arg2[%c32_2, %c0_3] : memref<48x64xf32, #tpu.memory_space<vmem>>, vector<16x64xf32>
    %c0_4 = arith.constant 0 : index
    %c0_5 = arith.constant 0 : index
    %3 = vector.load %arg3[%c0_4, %c0_5] : memref<1x128xf32, #tpu.memory_space<vmem>>, vector<1x32xf32>
    %c0_6 = arith.constant 0 : index
    %c32_7 = arith.constant 32 : index
    %4 = vector.load %arg3[%c0_6, %c32_7] : memref<1x128xf32, #tpu.memory_space<vmem>>, vector<1x64xf32>
    %c0_8 = arith.constant 0 : index
    %c96 = arith.constant 96 : index
    %5 = vector.load %arg3[%c0_8, %c96] : memref<1x128xf32, #tpu.memory_space<vmem>>, vector<1x32xf32>
    %c0_9 = arith.constant 0 : index
    %c0_10 = arith.constant 0 : index
    %6 = vector.load %arg0[%c0_9, %c0_10] : memref<16x32xf32, #tpu.memory_space<vmem>>, vector<16x32xf32>
    %cst = arith.constant dense<0.000000e+00> : vector<16x32xf32>
    %7 = tpu.matmul %6, %0, %cst {dimension_numbers = #tpu.dot_dimension_numbers<[1], [0], [0], [1], [0, 0, 1, 1], [], []>} : vector<16x32xf32>, vector<32x32xf32>, vector<16x32xf32> -> vector<16x32xf32>
    %8 = vector.broadcast %3 : vector<1x32xf32> to vector<16x32xf32>
    %9 = arith.addf %7, %8 : vector<16x32xf32>
    %c0_11 = arith.constant 0 : index
    %c0_12 = arith.constant 0 : index
    %c0_13 = arith.constant 0 : index
    %10 = vector.load %arg1[%c0_11, %c0_12, %c0_13] : memref<2x12x16xf32, #tpu.memory_space<vmem>>, vector<1x12x16xf32>
    %11 = vector.shape_cast %10 : vector<1x12x16xf32> to vector<12x16xf32>
    %cst_14 = arith.constant dense<0.000000e+00> : vector<12x64xf32>
    %12 = tpu.matmul %11, %2, %cst_14 {dimension_numbers = #tpu.dot_dimension_numbers<[1], [0], [0], [1], [0, 0, 1, 1], [], []>} : vector<12x16xf32>, vector<16x64xf32>, vector<12x64xf32> -> vector<12x64xf32>
    %13 = vector.broadcast %4 : vector<1x64xf32> to vector<12x64xf32>
    %14 = arith.addf %12, %13 : vector<12x64xf32>
    %15 = vector.extract_strided_slice %9 {offsets = [0, 0], sizes = [8, 32], strides = [1, 1]} : vector<16x32xf32> to vector<8x32xf32>
    %16 = vector.extract_strided_slice %15 {offsets = [0, 0], sizes = [8, 8], strides = [1, 1]} : vector<8x32xf32> to vector<8x8xf32>
    %17 = vector.extract_strided_slice %14 {offsets = [0, 0], sizes = [12, 8], strides = [1, 1]} : vector<12x64xf32> to vector<12x8xf32>
    %18 = vector.extract_strided_slice %14 {offsets = [0, 32], sizes = [12, 8], strides = [1, 1]} : vector<12x64xf32> to vector<12x8xf32>
    "tpu.trace_start"() <{level = 10 : i32, message = "qd,kd->qk"}> : () -> ()
    %cst_15 = arith.constant dense<0.000000e+00> : vector<8x12xf32>
    %19 = tpu.matmul %16, %17, %cst_15 {dimension_numbers = #tpu.dot_dimension_numbers<[1], [1], [0], [0], [0, 0, 1, 0], [], []>} : vector<8x8xf32>, vector<12x8xf32>, vector<8x12xf32> -> vector<8x12xf32>
    "tpu.trace_stop"() : () -> ()
    %cst_16 = arith.constant dense<0xFF800000> : vector<8xf32>
    %20 = vector.multi_reduction <maximumf>, %19, %cst_16 [1] : vector<8x12xf32> to vector<8xf32>
    %21 = vector.shape_cast %20 : vector<8xf32> to vector<8x1xf32>
    %22 = vector.broadcast %21 : vector<8x1xf32> to vector<8x12xf32>
    %23 = arith.subf %19, %22 : vector<8x12xf32>
    %24 = math.exp %23 : vector<8x12xf32>
    %cst_17 = arith.constant dense<0.000000e+00> : vector<8xf32>
    %25 = vector.multi_reduction <add>, %24, %cst_17 [1] : vector<8x12xf32> to vector<8xf32>
    %26 = vector.shape_cast %25 : vector<8xf32> to vector<8x1xf32>
    %27 = tpu.reciprocal %26 {approx = true} : vector<8x1xf32> -> vector<8x1xf32>
    %cst_18 = arith.constant dense<0.000000e+00> : vector<8x8xf32>
    %28 = tpu.matmul %24, %18, %cst_18 {dimension_numbers = #tpu.dot_dimension_numbers<[1], [0], [0], [1], [0, 0, 1, 1], [], []>} : vector<8x12xf32>, vector<12x8xf32>, vector<8x8xf32> -> vector<8x8xf32>
    %29 = vector.broadcast %27 : vector<8x1xf32> to vector<8x8xf32>
    %30 = arith.mulf %28, %29 : vector<8x8xf32>
    %31 = vector.extract_strided_slice %1 {offsets = [0, 0], sizes = [8, 32], strides = [1, 1]} : vector<32x32xf32> to vector<8x32xf32>
    %cst_19 = arith.constant dense<0.000000e+00> : vector<8x32xf32>
    %32 = tpu.matmul %30, %31, %cst_19 {dimension_numbers = #tpu.dot_dimension_numbers<[1], [0], [0], [1], [0, 0, 1, 1], [], []>} : vector<8x8xf32>, vector<8x32xf32>, vector<8x32xf32> -> vector<8x32xf32>
    %33 = vector.extract_strided_slice %15 {offsets = [0, 8], sizes = [8, 8], strides = [1, 1]} : vector<8x32xf32> to vector<8x8xf32>
    %34 = vector.extract_strided_slice %14 {offsets = [0, 8], sizes = [12, 8], strides = [1, 1]} : vector<12x64xf32> to vector<12x8xf32>
    %35 = vector.extract_strided_slice %14 {offsets = [0, 40], sizes = [12, 8], strides = [1, 1]} : vector<12x64xf32> to vector<12x8xf32>
    "tpu.trace_start"() <{level = 10 : i32, message = "qd,kd->qk"}> : () -> ()
    %cst_20 = arith.constant dense<0.000000e+00> : vector<8x12xf32>
    %36 = tpu.matmul %33, %34, %cst_20 {dimension_numbers = #tpu.dot_dimension_numbers<[1], [1], [0], [0], [0, 0, 1, 0], [], []>} : vector<8x8xf32>, vector<12x8xf32>, vector<8x12xf32> -> vector<8x12xf32>
    "tpu.trace_stop"() : () -> ()
    %cst_21 = arith.constant dense<0xFF800000> : vector<8xf32>
    %37 = vector.multi_reduction <maximumf>, %36, %cst_21 [1] : vector<8x12xf32> to vector<8xf32>
    %38 = vector.shape_cast %37 : vector<8xf32> to vector<8x1xf32>
    %39 = vector.broadcast %38 : vector<8x1xf32> to vector<8x12xf32>
    %40 = arith.subf %36, %39 : vector<8x12xf32>
    %41 = math.exp %40 : vector<8x12xf32>
    %cst_22 = arith.constant dense<0.000000e+00> : vector<8xf32>
    %42 = vector.multi_reduction <add>, %41, %cst_22 [1] : vector<8x12xf32> to vector<8xf32>
    %43 = vector.shape_cast %42 : vector<8xf32> to vector<8x1xf32>
    %44 = tpu.reciprocal %43 {approx = true} : vector<8x1xf32> -> vector<8x1xf32>
    %cst_23 = arith.constant dense<0.000000e+00> : vector<8x8xf32>
    %45 = tpu.matmul %41, %35, %cst_23 {dimension_numbers = #tpu.dot_dimension_numbers<[1], [0], [0], [1], [0, 0, 1, 1], [], []>} : vector<8x12xf32>, vector<12x8xf32>, vector<8x8xf32> -> vector<8x8xf32>
    %46 = vector.broadcast %44 : vector<8x1xf32> to vector<8x8xf32>
    %47 = arith.mulf %45, %46 : vector<8x8xf32>
    %48 = vector.extract_strided_slice %1 {offsets = [8, 0], sizes = [8, 32], strides = [1, 1]} : vector<32x32xf32> to vector<8x32xf32>
    %cst_24 = arith.constant dense<0.000000e+00> : vector<8x32xf32>
    %49 = tpu.matmul %47, %48, %cst_24 {dimension_numbers = #tpu.dot_dimension_numbers<[1], [0], [0], [1], [0, 0, 1, 1], [], []>} : vector<8x8xf32>, vector<8x32xf32>, vector<8x32xf32> -> vector<8x32xf32>
    %50 = arith.addf %32, %49 : vector<8x32xf32>
    %51 = vector.extract_strided_slice %15 {offsets = [0, 16], sizes = [8, 8], strides = [1, 1]} : vector<8x32xf32> to vector<8x8xf32>
    %52 = vector.extract_strided_slice %14 {offsets = [0, 16], sizes = [12, 8], strides = [1, 1]} : vector<12x64xf32> to vector<12x8xf32>
    %53 = vector.extract_strided_slice %14 {offsets = [0, 48], sizes = [12, 8], strides = [1, 1]} : vector<12x64xf32> to vector<12x8xf32>
    "tpu.trace_start"() <{level = 10 : i32, message = "qd,kd->qk"}> : () -> ()
    %cst_25 = arith.constant dense<0.000000e+00> : vector<8x12xf32>
    %54 = tpu.matmul %51, %52, %cst_25 {dimension_numbers = #tpu.dot_dimension_numbers<[1], [1], [0], [0], [0, 0, 1, 0], [], []>} : vector<8x8xf32>, vector<12x8xf32>, vector<8x12xf32> -> vector<8x12xf32>
    "tpu.trace_stop"() : () -> ()
    %cst_26 = arith.constant dense<0xFF800000> : vector<8xf32>
    %55 = vector.multi_reduction <maximumf>, %54, %cst_26 [1] : vector<8x12xf32> to vector<8xf32>
    %56 = vector.shape_cast %55 : vector<8xf32> to vector<8x1xf32>
    %57 = vector.broadcast %56 : vector<8x1xf32> to vector<8x12xf32>
    %58 = arith.subf %54, %57 : vector<8x12xf32>
    %59 = math.exp %58 : vector<8x12xf32>
    %cst_27 = arith.constant dense<0.000000e+00> : vector<8xf32>
    %60 = vector.multi_reduction <add>, %59, %cst_27 [1] : vector<8x12xf32> to vector<8xf32>
    %61 = vector.shape_cast %60 : vector<8xf32> to vector<8x1xf32>
    %62 = tpu.reciprocal %61 {approx = true} : vector<8x1xf32> -> vector<8x1xf32>
    %cst_28 = arith.constant dense<0.000000e+00> : vector<8x8xf32>
    %63 = tpu.matmul %59, %53, %cst_28 {dimension_numbers = #tpu.dot_dimension_numbers<[1], [0], [0], [1], [0, 0, 1, 1], [], []>} : vector<8x12xf32>, vector<12x8xf32>, vector<8x8xf32> -> vector<8x8xf32>
    %64 = vector.broadcast %62 : vector<8x1xf32> to vector<8x8xf32>
    %65 = arith.mulf %63, %64 : vector<8x8xf32>
    %66 = vector.extract_strided_slice %1 {offsets = [16, 0], sizes = [8, 32], strides = [1, 1]} : vector<32x32xf32> to vector<8x32xf32>
    %cst_29 = arith.constant dense<0.000000e+00> : vector<8x32xf32>
    %67 = tpu.matmul %65, %66, %cst_29 {dimension_numbers = #tpu.dot_dimension_numbers<[1], [0], [0], [1], [0, 0, 1, 1], [], []>} : vector<8x8xf32>, vector<8x32xf32>, vector<8x32xf32> -> vector<8x32xf32>
    %68 = arith.addf %50, %67 : vector<8x32xf32>
    %69 = vector.extract_strided_slice %15 {offsets = [0, 24], sizes = [8, 8], strides = [1, 1]} : vector<8x32xf32> to vector<8x8xf32>
    %70 = vector.extract_strided_slice %14 {offsets = [0, 24], sizes = [12, 8], strides = [1, 1]} : vector<12x64xf32> to vector<12x8xf32>
    %71 = vector.extract_strided_slice %14 {offsets = [0, 56], sizes = [12, 8], strides = [1, 1]} : vector<12x64xf32> to vector<12x8xf32>
    "tpu.trace_start"() <{level = 10 : i32, message = "qd,kd->qk"}> : () -> ()
    %cst_30 = arith.constant dense<0.000000e+00> : vector<8x12xf32>
    %72 = tpu.matmul %69, %70, %cst_30 {dimension_numbers = #tpu.dot_dimension_numbers<[1], [1], [0], [0], [0, 0, 1, 0], [], []>} : vector<8x8xf32>, vector<12x8xf32>, vector<8x12xf32> -> vector<8x12xf32>
    "tpu.trace_stop"() : () -> ()
    %cst_31 = arith.constant dense<0xFF800000> : vector<8xf32>
    %73 = vector.multi_reduction <maximumf>, %72, %cst_31 [1] : vector<8x12xf32> to vector<8xf32>
    %74 = vector.shape_cast %73 : vector<8xf32> to vector<8x1xf32>
    %75 = vector.broadcast %74 : vector<8x1xf32> to vector<8x12xf32>
    %76 = arith.subf %72, %75 : vector<8x12xf32>
    %77 = math.exp %76 : vector<8x12xf32>
    %cst_32 = arith.constant dense<0.000000e+00> : vector<8xf32>
    %78 = vector.multi_reduction <add>, %77, %cst_32 [1] : vector<8x12xf32> to vector<8xf32>
    %79 = vector.shape_cast %78 : vector<8xf32> to vector<8x1xf32>
    %80 = tpu.reciprocal %79 {approx = true} : vector<8x1xf32> -> vector<8x1xf32>
    %cst_33 = arith.constant dense<0.000000e+00> : vector<8x8xf32>
    %81 = tpu.matmul %77, %71, %cst_33 {dimension_numbers = #tpu.dot_dimension_numbers<[1], [0], [0], [1], [0, 0, 1, 1], [], []>} : vector<8x12xf32>, vector<12x8xf32>, vector<8x8xf32> -> vector<8x8xf32>
    %82 = vector.broadcast %80 : vector<8x1xf32> to vector<8x8xf32>
    %83 = arith.mulf %81, %82 : vector<8x8xf32>
    %84 = vector.extract_strided_slice %1 {offsets = [24, 0], sizes = [8, 32], strides = [1, 1]} : vector<32x32xf32> to vector<8x32xf32>
    %cst_34 = arith.constant dense<0.000000e+00> : vector<8x32xf32>
    %85 = tpu.matmul %83, %84, %cst_34 {dimension_numbers = #tpu.dot_dimension_numbers<[1], [0], [0], [1], [0, 0, 1, 1], [], []>} : vector<8x8xf32>, vector<8x32xf32>, vector<8x32xf32> -> vector<8x32xf32>
    %86 = arith.addf %68, %85 : vector<8x32xf32>
    %87 = vector.broadcast %5 : vector<1x32xf32> to vector<8x32xf32>
    %88 = arith.addf %86, %87 : vector<8x32xf32>
    %c0_35 = arith.constant 0 : index
    %c0_36 = arith.constant 0 : index
    %89 = vector.load %arg4[%c0_35, %c0_36] : memref<16x32xf32, #tpu.memory_space<vmem>>, vector<8x32xf32>
    tpu.vector_store %arg4[%c0_35, %c0_36], %88 {strides = array<i32>} : memref<16x32xf32, #tpu.memory_space<vmem>>, vector<8x32xf32>,
    %c1 = arith.constant 1 : index
    %c0_37 = arith.constant 0 : index
    %c0_38 = arith.constant 0 : index
    %90 = vector.load %arg1[%c1, %c0_37, %c0_38] : memref<2x12x16xf32, #tpu.memory_space<vmem>>, vector<1x12x16xf32>
    %91 = vector.shape_cast %90 : vector<1x12x16xf32> to vector<12x16xf32>
    %cst_39 = arith.constant dense<0.000000e+00> : vector<12x64xf32>
    %92 = tpu.matmul %91, %2, %cst_39 {dimension_numbers = #tpu.dot_dimension_numbers<[1], [0], [0], [1], [0, 0, 1, 1], [], []>} : vector<12x16xf32>, vector<16x64xf32>, vector<12x64xf32> -> vector<12x64xf32>
    %93 = vector.broadcast %4 : vector<1x64xf32> to vector<12x64xf32>
    %94 = arith.addf %92, %93 : vector<12x64xf32>
    %95 = vector.extract_strided_slice %9 {offsets = [8, 0], sizes = [8, 32], strides = [1, 1]} : vector<16x32xf32> to vector<8x32xf32>
    %96 = vector.extract_strided_slice %95 {offsets = [0, 0], sizes = [8, 8], strides = [1, 1]} : vector<8x32xf32> to vector<8x8xf32>
    %97 = vector.extract_strided_slice %94 {offsets = [0, 0], sizes = [12, 8], strides = [1, 1]} : vector<12x64xf32> to vector<12x8xf32>
    %98 = vector.extract_strided_slice %94 {offsets = [0, 32], sizes = [12, 8], strides = [1, 1]} : vector<12x64xf32> to vector<12x8xf32>
    "tpu.trace_start"() <{level = 10 : i32, message = "qd,kd->qk"}> : () -> ()
    %cst_40 = arith.constant dense<0.000000e+00> : vector<8x12xf32>
    %99 = tpu.matmul %96, %97, %cst_40 {dimension_numbers = #tpu.dot_dimension_numbers<[1], [1], [0], [0], [0, 0, 1, 0], [], []>} : vector<8x8xf32>, vector<12x8xf32>, vector<8x12xf32> -> vector<8x12xf32>
    "tpu.trace_stop"() : () -> ()
    %cst_41 = arith.constant dense<0xFF800000> : vector<8xf32>
    %100 = vector.multi_reduction <maximumf>, %99, %cst_41 [1] : vector<8x12xf32> to vector<8xf32>
    %101 = vector.shape_cast %100 : vector<8xf32> to vector<8x1xf32>
    %102 = vector.broadcast %101 : vector<8x1xf32> to vector<8x12xf32>
    %103 = arith.subf %99, %102 : vector<8x12xf32>
    %104 = math.exp %103 : vector<8x12xf32>
    %cst_42 = arith.constant dense<0.000000e+00> : vector<8xf32>
    %105 = vector.multi_reduction <add>, %104, %cst_42 [1] : vector<8x12xf32> to vector<8xf32>
    %106 = vector.shape_cast %105 : vector<8xf32> to vector<8x1xf32>
    %107 = tpu.reciprocal %106 {approx = true} : vector<8x1xf32> -> vector<8x1xf32>
    %cst_43 = arith.constant dense<0.000000e+00> : vector<8x8xf32>
    %108 = tpu.matmul %104, %98, %cst_43 {dimension_numbers = #tpu.dot_dimension_numbers<[1], [0], [0], [1], [0, 0, 1, 1], [], []>} : vector<8x12xf32>, vector<12x8xf32>, vector<8x8xf32> -> vector<8x8xf32>
    %109 = vector.broadcast %107 : vector<8x1xf32> to vector<8x8xf32>
    %110 = arith.mulf %108, %109 : vector<8x8xf32>
    %111 = vector.extract_strided_slice %1 {offsets = [0, 0], sizes = [8, 32], strides = [1, 1]} : vector<32x32xf32> to vector<8x32xf32>
    %cst_44 = arith.constant dense<0.000000e+00> : vector<8x32xf32>
    %112 = tpu.matmul %110, %111, %cst_44 {dimension_numbers = #tpu.dot_dimension_numbers<[1], [0], [0], [1], [0, 0, 1, 1], [], []>} : vector<8x8xf32>, vector<8x32xf32>, vector<8x32xf32> -> vector<8x32xf32>
    %113 = vector.extract_strided_slice %95 {offsets = [0, 8], sizes = [8, 8], strides = [1, 1]} : vector<8x32xf32> to vector<8x8xf32>
    %114 = vector.extract_strided_slice %94 {offsets = [0, 8], sizes = [12, 8], strides = [1, 1]} : vector<12x64xf32> to vector<12x8xf32>
    %115 = vector.extract_strided_slice %94 {offsets = [0, 40], sizes = [12, 8], strides = [1, 1]} : vector<12x64xf32> to vector<12x8xf32>
    "tpu.trace_start"() <{level = 10 : i32, message = "qd,kd->qk"}> : () -> ()
    %cst_45 = arith.constant dense<0.000000e+00> : vector<8x12xf32>
    %116 = tpu.matmul %113, %114, %cst_45 {dimension_numbers = #tpu.dot_dimension_numbers<[1], [1], [0], [0], [0, 0, 1, 0], [], []>} : vector<8x8xf32>, vector<12x8xf32>, vector<8x12xf32> -> vector<8x12xf32>
    "tpu.trace_stop"() : () -> ()
    %cst_46 = arith.constant dense<0xFF800000> : vector<8xf32>
    %117 = vector.multi_reduction <maximumf>, %116, %cst_46 [1] : vector<8x12xf32> to vector<8xf32>
    %118 = vector.shape_cast %117 : vector<8xf32> to vector<8x1xf32>
    %119 = vector.broadcast %118 : vector<8x1xf32> to vector<8x12xf32>
    %120 = arith.subf %116, %119 : vector<8x12xf32>
    %121 = math.exp %120 : vector<8x12xf32>
    %cst_47 = arith.constant dense<0.000000e+00> : vector<8xf32>
    %122 = vector.multi_reduction <add>, %121, %cst_47 [1] : vector<8x12xf32> to vector<8xf32>
    %123 = vector.shape_cast %122 : vector<8xf32> to vector<8x1xf32>
    %124 = tpu.reciprocal %123 {approx = true} : vector<8x1xf32> -> vector<8x1xf32>
    %cst_48 = arith.constant dense<0.000000e+00> : vector<8x8xf32>
    %125 = tpu.matmul %121, %115, %cst_48 {dimension_numbers = #tpu.dot_dimension_numbers<[1], [0], [0], [1], [0, 0, 1, 1], [], []>} : vector<8x12xf32>, vector<12x8xf32>, vector<8x8xf32> -> vector<8x8xf32>
    %126 = vector.broadcast %124 : vector<8x1xf32> to vector<8x8xf32>
    %127 = arith.mulf %125, %126 : vector<8x8xf32>
    %128 = vector.extract_strided_slice %1 {offsets = [8, 0], sizes = [8, 32], strides = [1, 1]} : vector<32x32xf32> to vector<8x32xf32>
    %cst_49 = arith.constant dense<0.000000e+00> : vector<8x32xf32>
    %129 = tpu.matmul %127, %128, %cst_49 {dimension_numbers = #tpu.dot_dimension_numbers<[1], [0], [0], [1], [0, 0, 1, 1], [], []>} : vector<8x8xf32>, vector<8x32xf32>, vector<8x32xf32> -> vector<8x32xf32>
    %130 = arith.addf %112, %129 : vector<8x32xf32>
    %131 = vector.extract_strided_slice %95 {offsets = [0, 16], sizes = [8, 8], strides = [1, 1]} : vector<8x32xf32> to vector<8x8xf32>
    %132 = vector.extract_strided_slice %94 {offsets = [0, 16], sizes = [12, 8], strides = [1, 1]} : vector<12x64xf32> to vector<12x8xf32>
    %133 = vector.extract_strided_slice %94 {offsets = [0, 48], sizes = [12, 8], strides = [1, 1]} : vector<12x64xf32> to vector<12x8xf32>
    "tpu.trace_start"() <{level = 10 : i32, message = "qd,kd->qk"}> : () -> ()
    %cst_50 = arith.constant dense<0.000000e+00> : vector<8x12xf32>
    %134 = tpu.matmul %131, %132, %cst_50 {dimension_numbers = #tpu.dot_dimension_numbers<[1], [1], [0], [0], [0, 0, 1, 0], [], []>} : vector<8x8xf32>, vector<12x8xf32>, vector<8x12xf32> -> vector<8x12xf32>
    "tpu.trace_stop"() : () -> ()
    %cst_51 = arith.constant dense<0xFF800000> : vector<8xf32>
    %135 = vector.multi_reduction <maximumf>, %134, %cst_51 [1] : vector<8x12xf32> to vector<8xf32>
    %136 = vector.shape_cast %135 : vector<8xf32> to vector<8x1xf32>
    %137 = vector.broadcast %136 : vector<8x1xf32> to vector<8x12xf32>
    %138 = arith.subf %134, %137 : vector<8x12xf32>
    %139 = math.exp %138 : vector<8x12xf32>
    %cst_52 = arith.constant dense<0.000000e+00> : vector<8xf32>
    %140 = vector.multi_reduction <add>, %139, %cst_52 [1] : vector<8x12xf32> to vector<8xf32>
    %141 = vector.shape_cast %140 : vector<8xf32> to vector<8x1xf32>
    %142 = tpu.reciprocal %141 {approx = true} : vector<8x1xf32> -> vector<8x1xf32>
    %cst_53 = arith.constant dense<0.000000e+00> : vector<8x8xf32>
    %143 = tpu.matmul %139, %133, %cst_53 {dimension_numbers = #tpu.dot_dimension_numbers<[1], [0], [0], [1], [0, 0, 1, 1], [], []>} : vector<8x12xf32>, vector<12x8xf32>, vector<8x8xf32> -> vector<8x8xf32>
    %144 = vector.broadcast %142 : vector<8x1xf32> to vector<8x8xf32>
    %145 = arith.mulf %143, %144 : vector<8x8xf32>
    %146 = vector.extract_strided_slice %1 {offsets = [16, 0], sizes = [8, 32], strides = [1, 1]} : vector<32x32xf32> to vector<8x32xf32>
    %cst_54 = arith.constant dense<0.000000e+00> : vector<8x32xf32>
    %147 = tpu.matmul %145, %146, %cst_54 {dimension_numbers = #tpu.dot_dimension_numbers<[1], [0], [0], [1], [0, 0, 1, 1], [], []>} : vector<8x8xf32>, vector<8x32xf32>, vector<8x32xf32> -> vector<8x32xf32>
    %148 = arith.addf %130, %147 : vector<8x32xf32>
    %149 = vector.extract_strided_slice %95 {offsets = [0, 24], sizes = [8, 8], strides = [1, 1]} : vector<8x32xf32> to vector<8x8xf32>
    %150 = vector.extract_strided_slice %94 {offsets = [0, 24], sizes = [12, 8], strides = [1, 1]} : vector<12x64xf32> to vector<12x8xf32>
    %151 = vector.extract_strided_slice %94 {offsets = [0, 56], sizes = [12, 8], strides = [1, 1]} : vector<12x64xf32> to vector<12x8xf32>
    "tpu.trace_start"() <{level = 10 : i32, message = "qd,kd->qk"}> : () -> ()
    %cst_55 = arith.constant dense<0.000000e+00> : vector<8x12xf32>
    %152 = tpu.matmul %149, %150, %cst_55 {dimension_numbers = #tpu.dot_dimension_numbers<[1], [1], [0], [0], [0, 0, 1, 0], [], []>} : vector<8x8xf32>, vector<12x8xf32>, vector<8x12xf32> -> vector<8x12xf32>
    "tpu.trace_stop"() : () -> ()
    %cst_56 = arith.constant dense<0xFF800000> : vector<8xf32>
    %153 = vector.multi_reduction <maximumf>, %152, %cst_56 [1] : vector<8x12xf32> to vector<8xf32>
    %154 = vector.shape_cast %153 : vector<8xf32> to vector<8x1xf32>
    %155 = vector.broadcast %154 : vector<8x1xf32> to vector<8x12xf32>
    %156 = arith.subf %152, %155 : vector<8x12xf32>
    %157 = math.exp %156 : vector<8x12xf32>
    %cst_57 = arith.constant dense<0.000000e+00> : vector<8xf32>
    %158 = vector.multi_reduction <add>, %157, %cst_57 [1] : vector<8x12xf32> to vector<8xf32>
    %159 = vector.shape_cast %158 : vector<8xf32> to vector<8x1xf32>
    %160 = tpu.reciprocal %159 {approx = true} : vector<8x1xf32> -> vector<8x1xf32>
    %cst_58 = arith.constant dense<0.000000e+00> : vector<8x8xf32>
    %161 = tpu.matmul %157, %151, %cst_58 {dimension_numbers = #tpu.dot_dimension_numbers<[1], [0], [0], [1], [0, 0, 1, 1], [], []>} : vector<8x12xf32>, vector<12x8xf32>, vector<8x8xf32> -> vector<8x8xf32>
    %162 = vector.broadcast %160 : vector<8x1xf32> to vector<8x8xf32>
    %163 = arith.mulf %161, %162 : vector<8x8xf32>
    %164 = vector.extract_strided_slice %1 {offsets = [24, 0], sizes = [8, 32], strides = [1, 1]} : vector<32x32xf32> to vector<8x32xf32>
    %cst_59 = arith.constant dense<0.000000e+00> : vector<8x32xf32>
    %165 = tpu.matmul %163, %164, %cst_59 {dimension_numbers = #tpu.dot_dimension_numbers<[1], [0], [0], [1], [0, 0, 1, 1], [], []>} : vector<8x8xf32>, vector<8x32xf32>, vector<8x32xf32> -> vector<8x32xf32>
    %166 = arith.addf %148, %165 : vector<8x32xf32>
    %167 = vector.broadcast %5 : vector<1x32xf32> to vector<8x32xf32>
    %168 = arith.addf %166, %167 : vector<8x32xf32>
    %c8 = arith.constant 8 : index
    %c0_60 = arith.constant 0 : index
    %169 = vector.load %arg4[%c8, %c0_60] : memref<16x32xf32, #tpu.memory_space<vmem>>, vector<8x32xf32>
    tpu.vector_store %arg4[%c8, %c0_60], %168 {strides = array<i32>} : memref<16x32xf32, #tpu.memory_space<vmem>>, vector<8x32xf32>,
    return
  }
}

</mosaic_0001>

<bundles_post_ra>
// kernel: tpu_custom_call.1
= control target key start
LH: loop header
LB: loop body
LE: loop exit
PB: predicated region body
PF: predicated region fallthrough
CT: control target
= control target key end

     0   :  { %9 = vsyncpa [#allocation3], 0  ;;  %s3112_s0 = inlined_call_operand.hbm [shape: f32[16,32], index: 0, kind: input, shape index: {}]   ;;  %s3113_s1 = inlined_call_operand.vmem [shape: f32[2,12,16], index: 1, kind: input, shape index: {}]   ;;  %s3114_s2 = inlined_call_operand.vmem [shape: f32[48,64], index: 2, kind: input, shape index: {}]   ;;  %s3115_s3 = inlined_call_operand.vmem [shape: f32[1,128], index: 3, kind: input, shape index: {}]   ;;  %s3116_s4 = inlined_call_operand.hbm [shape: f32[16,32], index: 4, kind: output, shape index: {}]  }
   0x1   :  { %10 = vsyncpa [#allocation4], 0  ;;  %s2711_s15 = smov [#allocation2]  }
   0x2   :  { %s16_s16 = sshll.u32 %s2711_s15, 4  ;;  %s17_s16 = int_to_ptr.vmem [resolvable:$true] %s16_s16 }
   0x3   :  { %s2675_s17 = scalar_lea.vmem %s17_s16, 256  ;;  %p2680_p1 = scmp.lt.s32.totalorder %s17_s16, %s17_s16 }
   0x4   :  { %p2676_p0 = scmp.ne.s32.totalorder %s17_s16, %s2675_s17  ;;  %p2681_p2 = scmp.lt.s32.totalorder %s2675_s17, %s2675_s17 }
   0x6   :  { %p2682_p3 = por %p2681_p2, %p2680_p1 }
   0x8   :  { %p2683_p4 = pnand %p2682_p3, %p2676_p0 }
   0xa   :  { %2686 = shalt.err (!%p2683_p4)
}
   0xb   :  { %s2712_s18 = smov 128   ;;  %s2713_s19 = smov 8  }
   0xc   :  { %22 = dma.hbm_to_vmem [thread:$0]  %s3112_s0, 256, %s17_s16, [#allocation3], %s2712_s18, %s2712_s18, %s2713_s19  }
   0xd   :  { %2707 = dma.done.wait [#allocation3], 256  }
   0xe   :  { %2708 = vsyncadd [#allocation3], 4294967040  ;;  %v2759_v0 = vld [vmem:[%s3114_s2 + $0x18] sm:$0xff]  ;;  %v2764_v1 = vld [vmem:[%s3114_s2 + $0x28] sm:$0xff]  ;;  %vm134_vm0 = vcmask 130048   ;;  %vm47_vm1 = vcmask 261120  }
   0xf   :  { %v2769_v2 = vld [vmem:[%s3114_s2 + $0x10] sm:$0xff]  ;;  %2444 = vmatprep.subr.mxu0 %v2759_v0  ;;  %2455 = vmatprep.subr.mxu1 %v2764_v1  ;;  %v2776_v3 = vld [vmem:[%s3114_s2 + $0x20] sm:$0xff]  ;;  %v2786_v5 = vld [vmem:[%s3114_s2 + $0x8] sm:$0xff]  ;;  %v2715_v11 = vmov 0.0   ;;  %vm2716_vm2 = vmmov 0   ;;  %vm216_vm3 = vcmask 64512  }
  0x10   :  { %2445 = vmatpush3.msra.mxu0 %v2759_v0  ;;  %2456 = vmatpush3.msra.mxu1 %v2764_v1  ;;  %v129_v4 = vld [vmem:[%s3113_s1] sm:$0xff]  ;;  %v130_v6 = vld [vmem:[%s3113_s1 + $0x8] sm:$0xf]  ;;  %vm315_vm4 = vcmask 1043456   ;;  %vm296_vm5 = vcmask 97280   ;;  %s2718_s13 = smov 88  }
  0x11   :  { %2446 = vmatprep.subr.mxu0 %v2769_v2  ;;  %2457 = vmatprep.subr.mxu1 %v2776_v3  ;;  %v2798_v7 = vld [vmem:[%s3114_s2] sm:$0xff]  ;;  %v40_v10 = vld [vmem:[#allocation2 + $0x8] sm:$0xff]  ;;  %s2714_s2 = smov 96   ;;  %s2719_s14 = smov 112   ;;  %v2338_v61 = vld [vmem:[%s3113_s1 + $0x10] sm:$0xff] }
  0x12   :  { %2447 = vmatpush3.msra.mxu0 %v2769_v2  ;;  %2458 = vmatpush3.msra.mxu1 %v2776_v3  ;;  %v39_v8 = vld [vmem:[#allocation2] sm:$0xff]  ;;  %s2720_s15 = smov 104   ;;  %s2721_s16 = smov 80   ;;  %v2339_v62 = vld [vmem:[%s3113_s1 + $0x18] sm:$0xf] }
  0x13   :  { %2459 = vmatprep.mubr.msk.f32.mxu1 %vm134_vm0, %v129_v4  ;;  %2448 = vmatprep.subr.mxu0 %v2786_v5  ;;  %v2805_v9 = vld [vmem:[%s3115_s3] ss:$0 sm:$0xff]  ;;  %s2717_s3 = smov 120   ;;  %s2722_s1 = smov 72  }
  0x14   :  { %2460 = vmatmul.mubr.msk.f32.vlgmr.msra.gmra.mxu1 %vm134_vm0, %v130_v6  ;;  %2449 = vmatpush3.msra.mxu0 %v2786_v5  ;;  %s2723_s23 = smov 32   ;;  %s2724_s24 = smov [#allocation5]  }
  0x15   :  { %2450 = vmatprep.subr.mxu0 %v2798_v7  ;;  %2452 = vmatprep.mubr.msk.f32.mxu0 %vm47_vm1, %v39_v8  ;;  %s2297_s25 = sshll.u32 %s2724_s24, 4  ;;  %s2298_s25 = int_to_ptr.vmem [resolvable:$true] %s2297_s25 }
  0x16   :  { %2451 = vmatpush3.msra.mxu0 %v2798_v7  ;;  %131 = vrot.lane.b32.xlu0 %v2805_v9, %s2714_s2  ;;  %s2687_s26 = scalar_lea.vmem %s2298_s25, 256  ;;  %p2692_p6 = scmp.lt.s32.totalorder %s2298_s25, %s2298_s25 }
  0x17   :  { %2453 = vmatmul.mubr.msk.f32.vlgmr.msra.gmra.mxu0 %vm47_vm1, %v40_v10  ;;  %2462 = vmatprep.subr.mxu1 %v2715_v11  ;;  %p2688_p5 = scmp.ne.s32.totalorder %s2298_s25, %s2687_s26  ;;  %p2693_p7 = scmp.lt.s32.totalorder %s2687_s26, %s2687_s26 }
  0x18   :  { %2469 = vmatprep.subr.mxu0 %v2715_v11  ;;  %2466 = vmatprep.mubr.msk.f32.mxu1 %vm2716_vm2, %v2715_v11 }
  0x19   :  { %2473 = vmatprep.mubr.msk.f32.mxu0 %vm2716_vm2, %v2715_v11  ;;  %p2694_p8 = por %p2693_p7, %p2692_p6 }
  0x1b   :  { %p2695_p9 = pnand %p2694_p8, %p2688_p5 }
  0x88   :  { %v2821_v12 = vpop.permute.xlu0 %131 }
  0xd4   :  { %v2461_v13 = vpop.f32.mrf.mxu1 }
  0xd5   :  { %v2824_v14 = vadd.f32 %v2461_v13, %v2821_v12 }
  0xd6   :  { %v207_v15 = vpop.f32.mrf.mxu1 }
  0xd7   :  { %309 = vrot.lane.b32.xlu1 %v2824_v14, %s2714_s2  ;;  %2463 = vmatpush3.xpose.msk.msra.mxu1 %vm216_vm3, %v2824_v14  ;;  %v2830_v16 = vpop.f32.mrf.mxu0  ;;  %v2834_v17 = vadd.f32 %v207_v15, %v2821_v12 }
  0xd8   :  { %2464 = vmatprep.subr.mxu1 %v2715_v11 }
  0xd9   :  { %v120_v18 = vpop.f32.mrf.mxu0 }
  0xda   :  { %v121_v19 = vadd.f32 %v2805_v9, %v120_v18 }
  0xdb   :  { %307 = vrot.lane.b32.xlu1 %v2834_v17, %s2714_s2  ;;  %2465 = vmatpush3.xpose.msk.msra.mxu1 %vm216_vm3, %v2834_v17 }
  0xdc   :  { %2483 = vmatprep.subr.mxu1 %v2715_v11 }
  0xde   :  { %2467 = vmatmul.mubr.msk.f32.vlgmr.msra.gmra.mxu1 %vm216_vm3, %v121_v19 }
  0xdf   :  { %393 = vrot.lane.b32.xlu1 %v2824_v14, %s2717_s3  ;;  %2487 = vmatprep.mubr.msk.f32.mxu1 %vm2716_vm2, %v2715_v11 }
  0xe3   :  { %391 = vrot.lane.b32.xlu1 %v2834_v17, %s2717_s3 }
  0xe7   :  { %389 = vrot.lane.b32.xlu1 %v121_v19, %s2717_s3 }
 0x149   :  { %v310_v20 = vpop.permute.xlu1 %309 }
 0x14a   :  { %2470 = vmatpush3.msk.msra.mxu0 %vm315_vm4, %v310_v20 }
 0x14b   :  { %2471 = vmatprep.subr.mxu0 %v2715_v11 }
 0x14d   :  { %v308_v21 = vpop.permute.xlu1 %307 }
 0x14e   :  { %2472 = vmatpush3.msra.mxu0 %v308_v21 }
 0x14f   :  { %2476 = vmatprep.subr.mxu0 %v2715_v11 }
 0x151   :  { %v394_v29 = vpop.permute.xlu1 %393 }
 0x155   :  { %v392_v31 = vpop.permute.xlu1 %391 }
 0x159   :  { %v390_v32 = vpop.permute.xlu1 %389 }
 0x19e   :  { %v292_v22 = vpop.f32.mrf.mxu1 }
 0x19f   :  { %v297_v23 = vsel %vm296_vm5, %v292_v22, -inf }
 0x1a0   :  { %298 = vmax.xlane.f32.xlu0 %v297_v23  ;;  %v2468_v24 = vpop.f32.mrf.mxu1 }
 0x1b6   :  { %483 = vrot.lane.b32.xlu0 %v2824_v14, %s2718_s13 }
 0x229   :  { %v299_v25 = vpop.xlane.xlu0 %298 }
 0x22a   :  { %v300_v26 = vsub.f32 %v292_v22, %v299_v25 }
 0x22c   :  { %v301_v27 = vmul.f32 1.442695, %v300_v26 }
 0x22d   :  { %v484_v28 = vpop.permute.xlu0 %483 }
 0x22e   :  { %2635 = vpow2.f32 %v301_v27  ;;  %2484 = vmatpush3.msk.msra.mxu1 %vm315_vm4, %v484_v28 }
 0x22f   :  { %2485 = vmatprep.subr.mxu1 %v2715_v11 }
 0x23b   :  { %v2636_v30 = vpop.eup %2635 }
 0x23c   :  { %2474 = vmatmul.mubr.msk.f32.vlgmr.msra.gmra.mxu0 %vm296_vm5, %v2636_v30  ;;  %v303_v38 = vsel %vm296_vm5, %v2636_v30, 0.0  ;;  %v2975_v30 = vadd.f32 %v2830_v16, %v2805_v9 }
 0x23d   :  { %2477 = vmatpush3.xpose.msk.msra.mxu0 %vm216_vm3, %v394_v29  ;;  %2480 = vmatprep.mubr.msk.f32.mxu0 %vm2716_vm2, %v2715_v11 }
 0x23e   :  { %2478 = vmatprep.subr.mxu0 %v2715_v11 }
 0x241   :  { %2479 = vmatpush3.xpose.msk.msra.mxu0 %vm216_vm3, %v392_v31 }
 0x242   :  { %2495 = vmatprep.subr.mxu0 %v2715_v11 }
 0x244   :  { %2481 = vmatmul.mubr.msk.f32.vlgmr.msra.gmra.mxu0 %vm216_vm3, %v390_v32 }
 0x245   :  { %2497 = vmatprep.mubr.msk.f32.mxu0 %vm2716_vm2, %v2715_v11 }
 0x2fc   :  { %v384_v33 = vpop.f32.mrf.mxu0 }
 0x2fe   :  { %v2475_v34 = vpop.f32.mrf.mxu0 }
 0x304   :  { %v467_v35 = vpop.f32.mrf.mxu0 }
 0x305   :  { %v471_v36 = vsel %vm296_vm5, %v467_v35, -inf }
 0x306   :  { %472 = vmax.xlane.f32.xlu1 %v471_v36  ;;  %v2482_v37 = vpop.f32.mrf.mxu0 }
 0x317   :  { %481 = vrot.lane.b32.xlu1 %v2834_v17, %s2718_s13 }
 0x31b   :  { %563 = vrot.lane.b32.xlu1 %v2786_v5, %s2714_s2 }
 0x31f   :  { %720 = vrot.lane.b32.xlu1 %v2824_v14, %s2719_s14 }
 0x323   :  { %718 = vrot.lane.b32.xlu1 %v2834_v17, %s2719_s14 }
 0x327   :  { %716 = vrot.lane.b32.xlu1 %v121_v19, %s2719_s14 }
 0x32b   :  { %969 = vrot.lane.b32.xlu1 %v2834_v17, %s2720_s15 }
 0x32f   :  { %967 = vrot.lane.b32.xlu1 %v121_v19, %s2720_s15 }
 0x353   :  { %304 = vadd.xlane.f32.xlu1 %v303_v38 }
 0x364   :  { %640 = vrot.lane.b32.xlu1 %v2798_v7, %s2714_s2 }
 0x368   :  { %808 = vrot.lane.b32.xlu1 %v2834_v17, %s2721_s16 }
 0x36c   :  { %890 = vrot.lane.b32.xlu1 %v2769_v2, %s2714_s2 }
 0x38f   :  { %v473_v39 = vpop.xlane.xlu1 %472 }
 0x390   :  { %v474_v40 = vsub.f32 %v467_v35, %v473_v39 }
 0x392   :  { %v475_v41 = vmul.f32 1.442695, %v474_v40 }
 0x393   :  { %v482_v42 = vpop.permute.xlu1 %481 }
 0x394   :  { %2637 = vpow2.f32 %v475_v41  ;;  %2486 = vmatpush3.msra.mxu1 %v482_v42 }
 0x395   :  { %2490 = vmatprep.subr.mxu1 %v2715_v11 }
 0x397   :  { %v2889_v44 = vpop.permute.xlu1 %563 }
 0x39b   :  { %v721_v46 = vpop.permute.xlu1 %720 }
 0x39f   :  { %v719_v47 = vpop.permute.xlu1 %718 }
 0x3a1   :  { %v2638_v43 = vpop.eup %2637 }
 0x3a2   :  { %2488 = vmatmul.mubr.msk.f32.vlgmr.msra.gmra.mxu1 %vm296_vm5, %v2638_v43  ;;  %v477_v45 = vsel %vm296_vm5, %v2638_v43, 0.0 }
 0x3a3   :  { %478 = vadd.xlane.f32.xlu0 %v477_v45  ;;  %2491 = vmatpush3.msra.mxu1 %v2889_v44  ;;  %v717_v48 = vpop.permute.xlu1 %716 }
 0x3a4   :  { %2492 = vmatprep.mubr.msk.f32.mxu1 %vm2716_vm2, %v2715_v11  ;;  %2500 = vmatprep.subr.mxu1 %v2715_v11 }
 0x3a7   :  { %v970_v49 = vpop.permute.xlu1 %969 }
 0x3ab   :  { %v968_v50 = vpop.permute.xlu1 %967 }
 0x3b9   :  { %971 = vrot.lane.b32.xlu0 %v2824_v14, %s2720_s15 }
 0x3dc   :  { %v305_v51 = vpop.xlane.xlu1 %304 }
 0x3dd   :  { %2639 = vrcp.f32 %v305_v51 }
 0x3e0   :  { %v2899_v52 = vpop.permute.xlu1 %640 }
 0x3e1   :  { %2496 = vmatpush3.msra.mxu0 %v2899_v52 }
 0x3e2   :  { %2507 = vmatprep.subr.mxu0 %v2715_v11 }
 0x3e4   :  { %v809_v20 = vpop.permute.xlu1 %808 }
 0x3e8   :  { %v2950_v21 = vpop.permute.xlu1 %890 }
 0x3ea   :  { %v2640_v53 = vpop.eup %2639 }
 0x3eb   :  { %v388_v54 = vmul.f32 %v2640_v53, %v384_v33 }
 0x3ed   :  { %2498 = vmatmul.mubr.msk.f32.vlgmr.msra.gmra.mxu0 %vm216_vm3, %v388_v54 }
 0x3ee   :  { %2511 = vmatprep.mubr.msk.f32.mxu0 %vm2716_vm2, %v2715_v11 }
 0x42c   :  { %v479_v55 = vpop.xlane.xlu0 %478 }
 0x42d   :  { %2641 = vrcp.f32 %v479_v55 }
 0x430   :  { %v972_v60 = vpop.permute.xlu0 %971 }
 0x43a   :  { %v2642_v56 = vpop.eup %2641 }
 0x462   :  { %v557_v57 = vpop.f32.mrf.mxu1 }
 0x463   :  { %v561_v58 = vmul.f32 %v2642_v56, %v557_v57 }
 0x464   :  { %v2489_v59 = vpop.f32.mrf.mxu1 }
 0x465   :  { %2493 = vmatmul.mubr.msk.f32.vlgmr.msra.gmra.mxu1 %vm216_vm3, %v561_v58 }
 0x466   :  { %2501 = vmatpush3.xpose.msk.msra.mxu1 %vm216_vm3, %v721_v46  ;;  %2504 = vmatprep.mubr.msk.f32.mxu1 %vm2716_vm2, %v2715_v11 }
 0x467   :  { %2502 = vmatprep.subr.mxu1 %v2715_v11 }
 0x46a   :  { %2503 = vmatpush3.xpose.msk.msra.mxu1 %vm216_vm3, %v719_v47 }
 0x46b   :  { %2519 = vmatprep.subr.mxu1 %v2715_v11 }
 0x46d   :  { %2505 = vmatmul.mubr.msk.f32.vlgmr.msra.gmra.mxu1 %vm216_vm3, %v717_v48 }
 0x46e   :  { %2520 = vmatpush3.xpose.msk.msra.mxu1 %vm216_vm3, %v972_v60  ;;  %2523 = vmatprep.mubr.msk.f32.mxu1 %vm2716_vm2, %v2715_v11 }
 0x46f   :  { %2521 = vmatprep.subr.mxu1 %v2715_v11 }
 0x472   :  { %2522 = vmatpush3.xpose.msk.msra.mxu1 %vm216_vm3, %v970_v49 }
 0x473   :  { %2538 = vmatprep.subr.mxu1 %v2764_v1 }
 0x475   :  { %2524 = vmatmul.mubr.msk.f32.vlgmr.msra.gmra.mxu1 %vm216_vm3, %v968_v50 }
 0x476   :  { %2539 = vmatpush3.msra.mxu1 %v2764_v1  ;;  %2542 = vmatprep.mubr.msk.f32.mxu1 %vm134_vm0, %v2338_v61 }
 0x477   :  { %2540 = vmatprep.subr.mxu1 %v2776_v3 }
 0x478   :  { %2541 = vmatpush3.msra.mxu1 %v2776_v3 }
 0x479   :  { %2543 = vmatmul.mubr.msk.f32.vlgmr.msra.gmra.mxu1 %vm134_vm0, %v2339_v62  ;;  %2552 = vmatprep.subr.mxu1 %v2715_v11 }
 0x47a   :  { %2556 = vmatprep.mubr.msk.f32.mxu1 %vm2716_vm2, %v2715_v11 }
 0x4ad   :  { %v2935_v63 = vpop.f32.mrf.mxu0 }
 0x4af   :  { %v2499_v1 = vpop.f32.mrf.mxu0 }
 0x525   :  { %v2937_v2 = vpop.f32.mrf.mxu1 }
 0x526   :  { %v713_v40 = vadd.f32 %v2935_v63, %v2937_v2 }
 0x527   :  { %v2494_v4 = vpop.f32.mrf.mxu1 }
 0x52d   :  { %v794_v5 = vpop.f32.mrf.mxu1 }
 0x52e   :  { %v798_v6 = vsel %vm296_vm5, %v794_v5, -inf }
 0x52f   :  { %799 = vmax.xlane.f32.xlu0 %v798_v6  ;;  %v2506_v7 = vpop.f32.mrf.mxu1 }
 0x535   :  { %v1045_v8 = vpop.f32.mrf.mxu1 }
 0x536   :  { %v1049_v10 = vsel %vm296_vm5, %v1045_v8, -inf }
 0x537   :  { %v2525_v3 = vpop.f32.mrf.mxu1 }
 0x539   :  { %v2544_v27 = vpop.f32.mrf.mxu1 }
 0x53a   :  { %v2962_v28 = vadd.f32 %v2544_v27, %v2821_v12 }
 0x53b   :  { %v1298_v29 = vpop.f32.mrf.mxu1 }
 0x545   :  { %810 = vrot.lane.b32.xlu0 %v2824_v14, %s2721_s16 }
 0x564   :  { %1050 = vmax.xlane.f32.xlu0 %v1049_v10 }
 0x57a   :  { %1061 = vrot.lane.b32.xlu0 %v2824_v14, %s2722_s1 }
 0x57e   :  { %1141 = vrot.lane.b32.xlu0 %v2759_v0, %s2714_s2 }
 0x5b8   :  { %v800_v13 = vpop.xlane.xlu0 %799 }
 0x5b9   :  { %v801_v15 = vsub.f32 %v794_v5, %v800_v13 }
 0x5bb   :  { %v802_v18 = vmul.f32 1.442695, %v801_v15 }
 0x5bc   :  { %v811_v19 = vpop.permute.xlu0 %810 }
 0x5bd   :  { %2643 = vpow2.f32 %v802_v18  ;;  %2508 = vmatpush3.msk.msra.mxu0 %vm315_vm4, %v811_v19 }
 0x5be   :  { %2509 = vmatprep.subr.mxu0 %v2715_v11 }
 0x5bf   :  { %2510 = vmatpush3.msra.mxu0 %v809_v20 }
 0x5c0   :  { %2514 = vmatprep.subr.mxu0 %v2715_v11 }
 0x5ca   :  { %v2644_v22 = vpop.eup %2643 }
 0x5cb   :  { %2512 = vmatmul.mubr.msk.f32.vlgmr.msra.gmra.mxu0 %vm296_vm5, %v2644_v22  ;;  %v804_v0 = vsel %vm296_vm5, %v2644_v22, 0.0 }
 0x5cc   :  { %805 = vadd.xlane.f32.xlu1 %v804_v0  ;;  %2515 = vmatpush3.msra.mxu0 %v2950_v21 }
 0x5cd   :  { %2516 = vmatprep.mubr.msk.f32.mxu0 %vm2716_vm2, %v2715_v11  ;;  %2526 = vmatprep.subr.mxu0 %v2715_v11 }
 0x5dd   :  { %1059 = vrot.lane.b32.xlu1 %v2834_v17, %s2722_s1  ;;  %v2969_v17 = vadd.f32 %v1298_v29, %v2821_v12 }
 0x5ed   :  { %v1051_v14 = vpop.xlane.xlu0 %1050 }
 0x5ee   :  { %v1052_v23 = vsub.f32 %v1045_v8, %v1051_v14 }
 0x5f0   :  { %v1053_v24 = vmul.f32 1.442695, %v1052_v23 }
 0x5f1   :  { %v1062_v37 = vpop.permute.xlu0 %1061 }
 0x5f2   :  { %2645 = vpow2.f32 %v1053_v24 }
 0x5f5   :  { %v2994_v38 = vpop.permute.xlu0 %1141 }
 0x5ff   :  { %v2646_v25 = vpop.eup %2645 }
 0x600   :  { %v1055_v26 = vsel %vm296_vm5, %v2646_v25, 0.0 }
 0x601   :  { %1056 = vadd.xlane.f32.xlu1 %v1055_v26 }
 0x612   :  { %1398 = vrot.lane.b32.xlu1 %v2962_v28, %s2714_s2 }
 0x616   :  { %1481 = vrot.lane.b32.xlu1 %v2962_v28, %s2717_s3 }
 0x61a   :  { %1479 = vrot.lane.b32.xlu1 %v2969_v17, %s2717_s3 }
 0x61e   :  { %1477 = vrot.lane.b32.xlu1 %v2975_v30, %s2717_s3 }
 0x622   :  { %1571 = vrot.lane.b32.xlu1 %v2962_v28, %s2718_s13 }
 0x626   :  { %1569 = vrot.lane.b32.xlu1 %v2969_v17, %s2718_s13 }
 0x655   :  { %v806_v31 = vpop.xlane.xlu1 %805 }
 0x656   :  { %2647 = vrcp.f32 %v806_v31 }
 0x659   :  { %v1060_v12 = vpop.permute.xlu1 %1059 }
 0x663   :  { %v2648_v33 = vpop.eup %2647 }
 0x68a   :  { %v1057_v32 = vpop.xlane.xlu1 %1056 }
 0x68b   :  { %v884_v34 = vpop.f32.mrf.mxu0  ;;  %2649 = vrcp.f32 %v1057_v32 }
 0x68c   :  { %v888_v35 = vmul.f32 %v2648_v33, %v884_v34 }
 0x68d   :  { %v2513_v36 = vpop.f32.mrf.mxu0 }
 0x68e   :  { %2517 = vmatmul.mubr.msk.f32.vlgmr.msra.gmra.mxu0 %vm216_vm3, %v888_v35  ;;  %v1399_v16 = vpop.permute.xlu1 %1398 }
 0x68f   :  { %2527 = vmatpush3.msk.msra.mxu0 %vm315_vm4, %v1062_v37  ;;  %2553 = vmatpush3.msk.msra.mxu1 %vm315_vm4, %v1399_v16 }
 0x690   :  { %2528 = vmatprep.subr.mxu0 %v2715_v11  ;;  %2530 = vmatprep.mubr.msk.f32.mxu0 %vm2716_vm2, %v2715_v11 }
 0x691   :  { %2529 = vmatpush3.msra.mxu0 %v1060_v12  ;;  %2554 = vmatprep.subr.mxu1 %v2715_v11 }
 0x692   :  { %2531 = vmatmul.mubr.msk.f32.vlgmr.msra.gmra.mxu0 %vm296_vm5, %v2646_v25  ;;  %2533 = vmatprep.subr.mxu0 %v2715_v11  ;;  %v1482_v39 = vpop.permute.xlu1 %1481 }
 0x693   :  { %2535 = vmatprep.mubr.msk.f32.mxu0 %vm2716_vm2, %v2715_v11  ;;  %2534 = vmatpush3.msra.mxu0 %v2994_v38 }
 0x694   :  { %2545 = vmatprep.subr.mxu0 %v2715_v11 }
 0x696   :  { %v1480_v41 = vpop.permute.xlu1 %1479 }
 0x698   :  { %v2650_v46 = vpop.eup %2649 }
 0x69a   :  { %v1478_v48 = vpop.permute.xlu1 %1477 }
 0x69e   :  { %v1572_v51 = vpop.permute.xlu1 %1571 }
 0x6a2   :  { %v1570_v53 = vpop.permute.xlu1 %1569 }
 0x74e   :  { %v962_v42 = vpop.f32.mrf.mxu0 }
 0x74f   :  { %v966_v43 = vadd.f32 %v962_v42, %v713_v40 }
 0x750   :  { %v2518_v45 = vpop.f32.mrf.mxu0 }
 0x752   :  { %v1135_v47 = vpop.f32.mrf.mxu0 }
 0x753   :  { %v1139_v49 = vmul.f32 %v2650_v46, %v1135_v47 }
 0x754   :  { %v2532_v50 = vpop.f32.mrf.mxu0 }
 0x755   :  { %2536 = vmatmul.mubr.msk.f32.vlgmr.msra.gmra.mxu0 %vm216_vm3, %v1139_v49 }
 0x756   :  { %2546 = vmatpush3.xpose.msk.msra.mxu0 %vm216_vm3, %v2962_v28  ;;  %2549 = vmatprep.mubr.msk.f32.mxu0 %vm2716_vm2, %v2715_v11 }
 0x757   :  { %2547 = vmatprep.subr.mxu0 %v2715_v11 }
 0x75a   :  { %2548 = vmatpush3.xpose.msk.msra.mxu0 %vm216_vm3, %v2969_v17 }
 0x75b   :  { %2566 = vmatprep.subr.mxu0 %v2715_v11 }
 0x75d   :  { %2550 = vmatmul.mubr.msk.f32.vlgmr.msra.gmra.mxu0 %vm216_vm3, %v2975_v30 }
 0x75e   :  { %2567 = vmatpush3.msk.msra.mxu0 %vm315_vm4, %v1572_v51  ;;  %2570 = vmatprep.mubr.msk.f32.mxu0 %vm2716_vm2, %v2715_v11 }
 0x75f   :  { %2568 = vmatprep.subr.mxu0 %v2715_v11 }
 0x760   :  { %2569 = vmatpush3.msra.mxu0 %v1570_v53 }
 0x761   :  { %2573 = vmatprep.subr.mxu0 %v2715_v11 }
 0x815   :  { %v1213_v54 = vpop.f32.mrf.mxu0 }
 0x816   :  { %v3016_v55 = vadd.f32 %v1213_v54, %v966_v43 }
 0x817   :  { %v2537_v56 = vpop.f32.mrf.mxu0 }
 0x81d   :  { %v1382_v57 = vpop.f32.mrf.mxu0 }
 0x81e   :  { %v1386_v58 = vsel %vm296_vm5, %v1382_v57, -inf }
 0x81f   :  { %1387 = vmax.xlane.f32.xlu0 %v1386_v58  ;;  %v2551_v59 = vpop.f32.mrf.mxu0 }
 0x835   :  { %1396 = vrot.lane.b32.xlu0 %v2969_v17, %s2714_s2 }
 0x8a8   :  { %v1388_v60 = vpop.xlane.xlu0 %1387 }
 0x8a9   :  { %v1389_v61 = vsub.f32 %v1382_v57, %v1388_v60 }
 0x8ab   :  { %v1390_v62 = vmul.f32 1.442695, %v1389_v61 }
 0x8ac   :  { %v1397_v63 = vpop.permute.xlu0 %1396 }
 0x8ad   :  { %2651 = vpow2.f32 %v1390_v62  ;;  %2555 = vmatpush3.msra.mxu1 %v1397_v63 }
 0x8ae   :  { %2559 = vmatprep.subr.mxu1 %v2715_v11 }
 0x8ba   :  { %v2652_v1 = vpop.eup %2651 }
 0x8bb   :  { %2557 = vmatmul.mubr.msk.f32.vlgmr.msra.gmra.mxu1 %vm296_vm5, %v2652_v1 }
 0x8bc   :  { %2560 = vmatpush3.xpose.msk.msra.mxu1 %vm216_vm3, %v1482_v39  ;;  %2563 = vmatprep.mubr.msk.f32.mxu1 %vm2716_vm2, %v2715_v11 }
 0x8bd   :  { %2561 = vmatprep.subr.mxu1 %v2715_v11 }
 0x8c0   :  { %2562 = vmatpush3.xpose.msk.msra.mxu1 %vm216_vm3, %v1480_v41 }
 0x8c1   :  { %2578 = vmatprep.subr.mxu1 %v2715_v11 }
 0x8c3   :  { %2564 = vmatmul.mubr.msk.f32.vlgmr.msra.gmra.mxu1 %vm216_vm3, %v1478_v48 }
 0x8c4   :  { %2579 = vmatpush3.msra.mxu1 %v2899_v52  ;;  %2580 = vmatprep.mubr.msk.f32.mxu1 %vm2716_vm2, %v2715_v11  ;;  %v1392_v52 = vsel %vm296_vm5, %v2652_v1, 0.0 }
 0x8c5   :  { %2590 = vmatprep.subr.mxu1 %v2715_v11 }
 0x97b   :  { %v1472_v2 = vpop.f32.mrf.mxu1 }
 0x97d   :  { %v2558_v4 = vpop.f32.mrf.mxu1 }
 0x983   :  { %v1555_v5 = vpop.f32.mrf.mxu1 }
 0x984   :  { %v1559_v6 = vsel %vm296_vm5, %v1555_v5, -inf }
 0x985   :  { %1560 = vmax.xlane.f32.xlu0 %v1559_v6  ;;  %v2565_v7 = vpop.f32.mrf.mxu1 }
 0x99b   :  { %1800 = vrot.lane.b32.xlu0 %v2962_v28, %s2719_s14 }
 0x99f   :  { %1796 = vrot.lane.b32.xlu0 %v2975_v30, %s2719_s14 }
 0x9a3   :  { %2047 = vrot.lane.b32.xlu0 %v2962_v28, %s2720_s15 }
 0x9a7   :  { %2045 = vrot.lane.b32.xlu0 %v2969_v17, %s2720_s15 }
 0x9c6   :  { %1393 = vadd.xlane.f32.xlu0 %v1392_v52 }
 0x9dc   :  { %1890 = vrot.lane.b32.xlu0 %v2962_v28, %s2721_s16 }
 0xa0e   :  { %v1561_v8 = vpop.xlane.xlu0 %1560 }
 0xa0f   :  { %v1562_v3 = vsub.f32 %v1555_v5, %v1561_v8 }
 0xa11   :  { %v1563_v10 = vmul.f32 1.442695, %v1562_v3 }
 0xa12   :  { %v1801_v18 = vpop.permute.xlu0 %1800 }
 0xa13   :  { %2653 = vpow2.f32 %v1563_v10 }
 0xa16   :  { %v1797_v19 = vpop.permute.xlu0 %1796 }
 0xa1a   :  { %v2048_v20 = vpop.permute.xlu0 %2047 }
 0xa1e   :  { %v2046_v22 = vpop.permute.xlu0 %2045 }
 0xa20   :  { %v2654_v13 = vpop.eup %2653 }
 0xa21   :  { %2571 = vmatmul.mubr.msk.f32.vlgmr.msra.gmra.mxu0 %vm296_vm5, %v2654_v13  ;;  %v1565_v15 = vsel %vm296_vm5, %v2654_v13, 0.0 }
 0xa22   :  { %2574 = vmatpush3.msra.mxu0 %v2889_v44  ;;  %1566 = vadd.xlane.f32.xlu1 %v1565_v15 }
 0xa23   :  { %2575 = vmatprep.mubr.msk.f32.mxu0 %vm2716_vm2, %v2715_v11  ;;  %2583 = vmatprep.subr.mxu0 %v2715_v11 }
 0xa33   :  { %1798 = vrot.lane.b32.xlu1 %v2969_v17, %s2719_s14 }
 0xa37   :  { %2043 = vrot.lane.b32.xlu1 %v2975_v30, %s2720_s15 }
 0xa4f   :  { %v1394_v0 = vpop.xlane.xlu0 %1393 }
 0xa50   :  { %2655 = vrcp.f32 %v1394_v0 }
 0xa53   :  { %v1891_v23 = vpop.permute.xlu0 %1890 }
 0xa5d   :  { %v2656_v14 = vpop.eup %2655 }
 0xa5e   :  { %v1476_v44 = vmul.f32 %v2656_v14, %v1472_v2 }
 0xa60   :  { %2581 = vmatmul.mubr.msk.f32.vlgmr.msra.gmra.mxu1 %vm216_vm3, %v1476_v44 }
 0xa61   :  { %2591 = vmatpush3.msk.msra.mxu1 %vm315_vm4, %v1891_v23  ;;  %2594 = vmatprep.mubr.msk.f32.mxu1 %vm2716_vm2, %v2715_v11 }
 0xa62   :  { %2592 = vmatprep.subr.mxu1 %v2715_v11 }
 0xaab   :  { %v1567_v24 = vpop.xlane.xlu1 %1566 }
 0xaac   :  { %2657 = vrcp.f32 %v1567_v24 }
 0xaaf   :  { %v1799_v30 = vpop.permute.xlu1 %1798 }
 0xab3   :  { %v2044_v31 = vpop.permute.xlu1 %2043 }
 0xab9   :  { %v2658_v25 = vpop.eup %2657 }
 0xae1   :  { %v1645_v26 = vpop.f32.mrf.mxu0 }
 0xae2   :  { %v1649_v27 = vmul.f32 %v2658_v25, %v1645_v26 }
 0xae3   :  { %v2572_v29 = vpop.f32.mrf.mxu0 }
 0xae4   :  { %2576 = vmatmul.mubr.msk.f32.vlgmr.msra.gmra.mxu0 %vm216_vm3, %v1649_v27 }
 0xae5   :  { %2584 = vmatpush3.xpose.msk.msra.mxu0 %vm216_vm3, %v1801_v18  ;;  %2587 = vmatprep.mubr.msk.f32.mxu0 %vm2716_vm2, %v2715_v11 }
 0xae6   :  { %2585 = vmatprep.subr.mxu0 %v2715_v11 }
 0xae9   :  { %2586 = vmatpush3.xpose.msk.msra.mxu0 %vm216_vm3, %v1799_v30 }
 0xaea   :  { %2602 = vmatprep.subr.mxu0 %v2715_v11 }
 0xaec   :  { %2588 = vmatmul.mubr.msk.f32.vlgmr.msra.gmra.mxu0 %vm216_vm3, %v1797_v19 }
 0xaed   :  { %2603 = vmatpush3.xpose.msk.msra.mxu0 %vm216_vm3, %v2048_v20  ;;  %2606 = vmatprep.mubr.msk.f32.mxu0 %vm2716_vm2, %v2715_v11 }
 0xaee   :  { %2604 = vmatprep.subr.mxu0 %v2715_v11 }
 0xaf1   :  { %2605 = vmatpush3.xpose.msk.msra.mxu0 %vm216_vm3, %v2046_v22 }
 0xaf4   :  { %2607 = vmatmul.mubr.msk.f32.vlgmr.msra.gmra.mxu0 %vm216_vm3, %v2044_v31 }
 0xb20   :  { %v1792_v12 = vpop.f32.mrf.mxu1 }
 0xb22   :  { %v2582_v32 = vpop.f32.mrf.mxu1 }
 0xba4   :  { %v1719_v33 = vpop.f32.mrf.mxu0 }
 0xba5   :  { %v1793_v60 = vadd.f32 %v1792_v12, %v1719_v33 }
 0xba6   :  { %v2577_v34 = vpop.f32.mrf.mxu0 }
 0xbac   :  { %v1874_v35 = vpop.f32.mrf.mxu0 }
 0xbad   :  { %v1878_v36 = vsel %vm296_vm5, %v1874_v35, -inf }
 0xbae   :  { %1879 = vmax.xlane.f32.xlu1 %v1878_v36  ;;  %v2589_v37 = vpop.f32.mrf.mxu0 }
 0xbb4   :  { %v2121_v16 = vpop.f32.mrf.mxu0 }
 0xbb5   :  { %v2125_v40 = vsel %vm296_vm5, %v2121_v16, -inf }
 0xbb6   :  { %v2608_v39 = vpop.f32.mrf.mxu0 }
 0xbbf   :  { %1888 = vrot.lane.b32.xlu1 %v2969_v17, %s2721_s16 }
 0xbe3   :  { %2126 = vmax.xlane.f32.xlu1 %v2125_v40 }
 0xbf4   :  { %2135 = vrot.lane.b32.xlu1 %v2969_v17, %s2722_s1 }
 0xbf8   :  { %1218 = vrot.lane.b32.xlu1 %v2805_v9, %s2723_s23 }
 0xc37   :  { %v1880_v41 = vpop.xlane.xlu1 %1879 }
 0xc38   :  { %v1881_v42 = vsub.f32 %v1874_v35, %v1880_v41 }
 0xc3a   :  { %v1882_v43 = vmul.f32 1.442695, %v1881_v42 }
 0xc3b   :  { %v1889_v45 = vpop.permute.xlu1 %1888 }
 0xc3c   :  { %2659 = vpow2.f32 %v1882_v43  ;;  %2593 = vmatpush3.msra.mxu1 %v1889_v45 }
 0xc3d   :  { %2597 = vmatprep.subr.mxu1 %v2715_v11 }
 0xc49   :  { %v2660_v46 = vpop.eup %2659 }
 0xc4a   :  { %2595 = vmatmul.mubr.msk.f32.vlgmr.msra.gmra.mxu1 %vm296_vm5, %v2660_v46  ;;  %v1884_v47 = vsel %vm296_vm5, %v2660_v46, 0.0 }
 0xc4b   :  { %2598 = vmatpush3.msra.mxu1 %v2950_v21  ;;  %1885 = vadd.xlane.f32.xlu0 %v1884_v47 }
 0xc4c   :  { %2599 = vmatprep.mubr.msk.f32.mxu1 %vm2716_vm2, %v2715_v11  ;;  %2609 = vmatprep.subr.mxu1 %v2715_v11 }
 0xc61   :  { %2137 = vrot.lane.b32.xlu0 %v2962_v28, %s2722_s1 }
 0xc6c   :  { %v2127_v9 = vpop.xlane.xlu1 %2126 }
 0xc6d   :  { %v2128_v17 = vsub.f32 %v2121_v16, %v2127_v9 }
 0xc6f   :  { %v2129_v48 = vmul.f32 1.442695, %v2128_v17 }
 0xc70   :  { %v2136_v49 = vpop.permute.xlu1 %2135 }
 0xc71   :  { %2661 = vpow2.f32 %v2129_v48 }
 0xc74   :  { %v1219_v50 = vpop.permute.xlu1 %1218 }
 0xc75   :  { %v1221_v51 = vadd.f32 %v1219_v50, %v3016_v55 }
 0xc77   :  { %1222 = vst.msk [vmem:[#allocation5] sm:$0xff] %vm47_vm1, %v1221_v51 }
 0xc7e   :  { %v2662_v21 = vpop.eup %2661 }
 0xc7f   :  { %v2131_v53 = vsel %vm296_vm5, %v2662_v21, 0.0 }
 0xc80   :  { %2132 = vadd.xlane.f32.xlu0 %v2131_v53 }
 0xcd4   :  { %v1886_v54 = vpop.xlane.xlu0 %1885 }
 0xcd5   :  { %2663 = vrcp.f32 %v1886_v54 }
 0xcd8   :  { %v2138_v59 = vpop.permute.xlu0 %2137 }
 0xce2   :  { %v2664_v56 = vpop.eup %2663 }
 0xd09   :  { %v2133_v55 = vpop.xlane.xlu0 %2132 }
 0xd0a   :  { %v1964_v57 = vpop.f32.mrf.mxu1  ;;  %2665 = vrcp.f32 %v2133_v55 }
 0xd0b   :  { %v1968_v58 = vmul.f32 %v2664_v56, %v1964_v57 }
 0xd0c   :  { %v2596_v28 = vpop.f32.mrf.mxu1 }
 0xd0d   :  { %2600 = vmatmul.mubr.msk.f32.vlgmr.msra.gmra.mxu1 %vm216_vm3, %v1968_v58 }
 0xd0e   :  { %2610 = vmatpush3.msk.msra.mxu1 %vm315_vm4, %v2138_v59  ;;  %2613 = vmatprep.mubr.msk.f32.mxu1 %vm2716_vm2, %v2715_v11 }
 0xd0f   :  { %2611 = vmatprep.subr.mxu1 %v2715_v11 }
 0xd10   :  { %2612 = vmatpush3.msra.mxu1 %v2136_v49 }
 0xd11   :  { %2616 = vmatprep.subr.mxu1 %v2715_v11  ;;  %2614 = vmatmul.mubr.msk.f32.vlgmr.msra.gmra.mxu1 %vm296_vm5, %v2662_v21 }
 0xd12   :  { %2617 = vmatpush3.msra.mxu1 %v2994_v38  ;;  %2618 = vmatprep.mubr.msk.f32.mxu1 %vm2716_vm2, %v2715_v11 }
 0xd17   :  { %v2666_v1 = vpop.eup %2665 }
 0xdcd   :  { %v2038_v61 = vpop.f32.mrf.mxu1 }
 0xdce   :  { %v2042_v62 = vadd.f32 %v2038_v61, %v1793_v60 }
 0xdcf   :  { %v2601_v63 = vpop.f32.mrf.mxu1 }
 0xdd1   :  { %v2211_v2 = vpop.f32.mrf.mxu1 }
 0xdd2   :  { %v2215_v4 = vmul.f32 %v2666_v1, %v2211_v2 }
 0xdd3   :  { %v2615_v5 = vpop.f32.mrf.mxu1 }
 0xdd4   :  { %2619 = vmatmul.mubr.msk.f32.vlgmr.msra.gmra.mxu1 %vm216_vm3, %v2215_v4 }
 0xe94   :  { %v2285_v6 = vpop.f32.mrf.mxu1 }
 0xe95   :  { %v2289_v7 = vadd.f32 %v2285_v6, %v2042_v62 }
 0xe96   :  { %v2620_v38 = vpop.f32.mrf.mxu1 }
 0xe97   :  { %v2290_v52 = vadd.f32 %v2289_v7, %v1219_v50 }
 0xe99   :  { %2291 = vst.msk [vmem:[#allocation5 + $0x8] sm:$0xff] %vm47_vm1, %v2290_v52 }
 0xe9a   :  { %2698 = shalt.err (!%p2695_p9)
}
 0xe9b   :  { %2303 = dma.vmem_to_hbm [thread:$0]  %s2298_s25, 256, %s3116_s4, [#allocation4], %s2712_s18, %s2712_s18, %s2713_s19  }
 0xe9c   :  { %2709 = dma.done.wait [#allocation4], 256  }
 0xe9d   :  { %2710 = vsyncadd [#allocation4], 4294967040 }
 0xe9e   :  { %2307 = vsyncpa [#allocation3], 1 }
 0xe9f   :  { %2308 = vsyncpa [#allocation4], 1 }

</bundles_post_ra>
